<compile_context>
chip_gen: v6e
topology: v6e:2x2x1
jax: 0.10.0
libtpu: 0.0.40
codegen_flags: <defaults>
</compile_context>

<pallas_src>
import jax
import jax.numpy as jnp
from jax.experimental import pallas as pl
from jax.experimental.pallas import tpu as pltpu


def _layer_att_kernel(x_ref, o_ref):
    # x_ref / o_ref block shape: (Bb, N, D)
    x = x_ref[...].astype(jnp.float32)
    n = x.shape[1]

    # --- energy[b, i, m] = <x[b, i, :], x[b, m, :]> -------------------------
    # N is tiny (typically 4): compute the Gram matrix on the VPU/XLU
    # (broadcast-mul + lane reduce per row) instead of feeding a 4-row operand
    # to the 128/256-wide MXU.
    if n <= 8:
        rows = [
            jnp.sum(x[:, i:i + 1, :] * x, axis=-1)[:, None, :]   # (Bb, 1, N)
            for i in range(n)
        ]
        energy = jnp.concatenate(rows, axis=1)                    # (Bb, N, N)
    else:
        energy = jnp.einsum('bnd,bmd->bnm', x, x,
                            preferred_element_type=jnp.float32)

    # --- attention = softmax(rowmax(energy) - energy, axis=-1) --------------
    # Stable closed form: the stabilizing max of (rowmax - energy) is
    # (rowmax - rowmin), so the shifted exponent collapses to
    # (rowmin - energy), which is always <= 0 (no overflow, no NaN).
    p = jnp.exp(jnp.min(energy, axis=-1, keepdims=True) - energy)  # (Bb, N, N)
    attention = p / jnp.sum(p, axis=-1, keepdims=True)

    # --- out[b] = attention[b] @ x[b] ---------------------------------------
    # Contraction dim is N (tiny): unrolled VPU weighted row-sum instead of a
    # second MXU trip.
    if n <= 16:
        out = attention[:, :, 0:1] * x[:, 0:1, :]                 # (Bb, N, D)
        for m in range(1, n):
            out = out + attention[:, :, m:m + 1] * x[:, m:m + 1, :]
    else:
        out = jnp.einsum('bnm,bmd->bnd', attention, x,
                         preferred_element_type=jnp.float32)

    # out = 0.01 * out + x   (the module uses the literal 0.01, not gamma)
    o_ref[...] = (0.01 * out + x).astype(o_ref.dtype)


def _plan(B, N, D, itemsize):
    """Pick the batch-block size and an explicit scoped-VMEM limit."""
    try:
        vmem_cap = pltpu.get_tpu_info().vmem_capacity_bytes
    except Exception:
        vmem_cap = 64 * 1024 * 1024   # conservative: v7x per-TensorCore VMEM

    # Per batch element: double-buffered input + output blocks (2 + 2 copies
    # at the I/O dtype) plus ~3 f32-sized live intermediates in the body.
    per_b = N * D * (4 * itemsize + 3 * 4)

    # Keep each block well inside the smallest scoped-VMEM budget we target.
    budget = min(vmem_cap // 3, 24 * 1024 * 1024)
    bb = max(1, min(B, budget // max(per_b, 1)))

    # For larger batches keep >= 4 grid steps (>= 2 blocks per TensorCore on
    # v7x megacore -> prefetch/writeback overlap); tiny batches run one step.
    if B >= 4:
        bb = min(bb, pl.cdiv(B, 4))
    bb = max(bb, 1)

    # Explicit scoped-VMEM limit: real footprint + generous Mosaic headroom,
    # never above ~3/4 of physical VMEM.
    vmem_limit = int(min(vmem_cap * 3 // 4, bb * per_b + 16 * 1024 * 1024))
    return bb, vmem_limit


def layer_att(x):
    """x: (B, N, C, H, W) -> (B, N*C, H, W), matching Layer_Att.forward."""
    B, N, C, H, W = x.shape
    D = C * H * W
    x_flat = x.reshape(B, N, D)           # free reshape, == torch .view

    itemsize = x_flat.dtype.itemsize
    bb, vmem_limit = _plan(B, N, D, itemsize)
    nb = pl.cdiv(B, bb)

    cost = pl.CostEstimate(
        flops=4 * B * N * N * D,                   # Gram + weighted row-sum
        transcendentals=B * N * N,                 # exp
        bytes_accessed=2 * B * N * D * itemsize,   # read x + write out
    )

    out_flat = pl.pallas_call(
        _layer_att_kernel,
        out_shape=jax.ShapeDtypeStruct((B, N, D), x.dtype),
        grid_spec=pltpu.PrefetchScalarGridSpec(
            num_scalar_prefetch=0,
            grid=(nb,),
            in_specs=[pl.BlockSpec((bb, N, D), lambda b: (b, 0, 0))],
            out_specs=pl.BlockSpec((bb, N, D), lambda b: (b, 0, 0)),
        ),
        compiler_params=pltpu.CompilerParams(
            dimension_semantics=("parallel",),
            vmem_limit_bytes=vmem_limit,
        ),
        cost_estimate=cost,
        input_output_aliases={0: 0},      # output has x's shape/dtype
    )(x_flat)

    return out_flat.reshape(B, N * C, H, W)


def layer_att_ref(x):
    """Pure-JAX reference mirroring the PyTorch forward (full-f32 matmuls)."""
    B, N, C, H, W = x.shape
    q = x.reshape(B, N, -1)
    energy = jnp.einsum('bnd,bmd->bnm', q, q,
                        precision=jax.lax.Precision.HIGHEST)
    energy_new = jnp.max(energy, axis=-1, keepdims=True) - energy
    attention = jax.nn.softmax(energy_new, axis=-1)
    out = jnp.einsum('bnm,bmd->bnd', attention, q,
                     precision=jax.lax.Precision.HIGHEST)
    out = out.reshape(B, N, C, H, W)
    out = 0.01 * out + x
    return out.reshape(B, N * C, H, W)


if __name__ == "__main__":
    key = jax.random.PRNGKey(0)

    # nn.Parameter(torch.zeros(1)): defined by the module, unused in forward.
    gamma = jnp.zeros((1,), dtype=jnp.float32)  # noqa: F841

    # Small shapes consistent with the module's (B, N, C, H, W) input.
    B, N, C, H, W = 2, 4, 4, 16, 16
    x = jax.random.normal(key, (B, N, C, H, W), dtype=jnp.float32)

    out = jax.block_until_ready(layer_att(x))
    ref = layer_att_ref(x)

    assert out.shape == (B, N * C, H, W)
    assert bool(jnp.all(jnp.isfinite(out))), "non-finite output"
    assert jnp.allclose(out, ref, atol=1e-5, rtol=1e-5), "mismatch vs reference"

    print("KERNEL_OK")
</pallas_src>

<mosaic_0001>
module attributes {stable_mosaic.version = 11 : i64} {
  func.func @_layer_att_kernel(%arg0: i32, %arg1: memref<2x4x1024xf32, #tpu.memory_space<vmem>>, %arg2: memref<2x4x1024xf32, #tpu.memory_space<vmem>>) attributes {dimension_semantics = [#tpu.dimension_semantics<parallel>], iteration_bounds = array<i64: 1>, scalar_prefetch = 0 : i64, scratch_operands = 0 : i64, tpu.core_type = #tpu.core_type<tc>, window_params = [{transform_indices = @transform_0, window_bounds = array<i64: 2, 4, 1024>}, {transform_indices = @transform_1, window_bounds = array<i64: 2, 4, 1024>}]} {
    %c0 = arith.constant 0 : index
    %c0_0 = arith.constant 0 : index
    %c0_1 = arith.constant 0 : index
    %0 = vector.load %arg1[%c0, %c0_0, %c0_1] : memref<2x4x1024xf32, #tpu.memory_space<vmem>>, vector<2x4x1024xf32>
    %1 = vector.extract_strided_slice %0 {offsets = [0, 0, 0], sizes = [2, 1, 1024], strides = [1, 1, 1]} : vector<2x4x1024xf32> to vector<2x1x1024xf32>
    %2 = vector.broadcast %1 : vector<2x1x1024xf32> to vector<2x4x1024xf32>
    %3 = arith.mulf %2, %0 : vector<2x4x1024xf32>
    %cst = arith.constant dense<0.000000e+00> : vector<2x4xf32>
    %4 = vector.multi_reduction <add>, %3, %cst [2] : vector<2x4x1024xf32> to vector<2x4xf32>
    %5 = vector.shape_cast %4 : vector<2x4xf32> to vector<2x1x4xf32>
    %6 = vector.extract_strided_slice %0 {offsets = [0, 1, 0], sizes = [2, 1, 1024], strides = [1, 1, 1]} : vector<2x4x1024xf32> to vector<2x1x1024xf32>
    %7 = vector.broadcast %6 : vector<2x1x1024xf32> to vector<2x4x1024xf32>
    %8 = arith.mulf %7, %0 : vector<2x4x1024xf32>
    %cst_2 = arith.constant dense<0.000000e+00> : vector<2x4xf32>
    %9 = vector.multi_reduction <add>, %8, %cst_2 [2] : vector<2x4x1024xf32> to vector<2x4xf32>
    %10 = vector.shape_cast %9 : vector<2x4xf32> to vector<2x1x4xf32>
    %11 = vector.extract_strided_slice %0 {offsets = [0, 2, 0], sizes = [2, 1, 1024], strides = [1, 1, 1]} : vector<2x4x1024xf32> to vector<2x1x1024xf32>
    %12 = vector.broadcast %11 : vector<2x1x1024xf32> to vector<2x4x1024xf32>
    %13 = arith.mulf %12, %0 : vector<2x4x1024xf32>
    %cst_3 = arith.constant dense<0.000000e+00> : vector<2x4xf32>
    %14 = vector.multi_reduction <add>, %13, %cst_3 [2] : vector<2x4x1024xf32> to vector<2x4xf32>
    %15 = vector.shape_cast %14 : vector<2x4xf32> to vector<2x1x4xf32>
    %16 = vector.extract_strided_slice %0 {offsets = [0, 3, 0], sizes = [2, 1, 1024], strides = [1, 1, 1]} : vector<2x4x1024xf32> to vector<2x1x1024xf32>
    %17 = vector.broadcast %16 : vector<2x1x1024xf32> to vector<2x4x1024xf32>
    %18 = arith.mulf %17, %0 : vector<2x4x1024xf32>
    %cst_4 = arith.constant dense<0.000000e+00> : vector<2x4xf32>
    %19 = vector.multi_reduction <add>, %18, %cst_4 [2] : vector<2x4x1024xf32> to vector<2x4xf32>
    %20 = vector.shape_cast %19 : vector<2x4xf32> to vector<2x1x4xf32>
    %21 = tpu.concatenate %5, %10, %15, %20 in 1 : vector<2x1x4xf32>, vector<2x1x4xf32>, vector<2x1x4xf32>, vector<2x1x4xf32> -> vector<2x4x4xf32>
    %cst_5 = arith.constant dense<0x7F800000> : vector<2x4xf32>
    %22 = vector.multi_reduction <minimumf>, %21, %cst_5 [2] : vector<2x4x4xf32> to vector<2x4xf32>
    %23 = vector.shape_cast %22 : vector<2x4xf32> to vector<2x4x1xf32>
    %24 = vector.broadcast %23 : vector<2x4x1xf32> to vector<2x4x4xf32>
    %25 = arith.subf %24, %21 : vector<2x4x4xf32>
    %26 = math.exp %25 : vector<2x4x4xf32>
    %cst_6 = arith.constant dense<0.000000e+00> : vector<2x4xf32>
    %27 = vector.multi_reduction <add>, %26, %cst_6 [2] : vector<2x4x4xf32> to vector<2x4xf32>
    %28 = vector.shape_cast %27 : vector<2x4xf32> to vector<2x4x1xf32>
    %29 = vector.broadcast %28 : vector<2x4x1xf32> to vector<2x4x4xf32>
    %30 = arith.divf %26, %29 : vector<2x4x4xf32>
    %31 = vector.extract_strided_slice %30 {offsets = [0, 0, 0], sizes = [2, 4, 1], strides = [1, 1, 1]} : vector<2x4x4xf32> to vector<2x4x1xf32>
    %32 = vector.extract_strided_slice %0 {offsets = [0, 0, 0], sizes = [2, 1, 1024], strides = [1, 1, 1]} : vector<2x4x1024xf32> to vector<2x1x1024xf32>
    %33 = vector.broadcast %31 : vector<2x4x1xf32> to vector<2x4x1024xf32>
    %34 = vector.broadcast %32 : vector<2x1x1024xf32> to vector<2x4x1024xf32>
    %35 = arith.mulf %33, %34 : vector<2x4x1024xf32>
    %36 = vector.extract_strided_slice %30 {offsets = [0, 0, 1], sizes = [2, 4, 1], strides = [1, 1, 1]} : vector<2x4x4xf32> to vector<2x4x1xf32>
    %37 = vector.extract_strided_slice %0 {offsets = [0, 1, 0], sizes = [2, 1, 1024], strides = [1, 1, 1]} : vector<2x4x1024xf32> to vector<2x1x1024xf32>
    %38 = vector.broadcast %36 : vector<2x4x1xf32> to vector<2x4x1024xf32>
    %39 = vector.broadcast %37 : vector<2x1x1024xf32> to vector<2x4x1024xf32>
    %40 = arith.mulf %38, %39 : vector<2x4x1024xf32>
    %41 = arith.addf %35, %40 : vector<2x4x1024xf32>
    %42 = vector.extract_strided_slice %30 {offsets = [0, 0, 2], sizes = [2, 4, 1], strides = [1, 1, 1]} : vector<2x4x4xf32> to vector<2x4x1xf32>
    %43 = vector.extract_strided_slice %0 {offsets = [0, 2, 0], sizes = [2, 1, 1024], strides = [1, 1, 1]} : vector<2x4x1024xf32> to vector<2x1x1024xf32>
    %44 = vector.broadcast %42 : vector<2x4x1xf32> to vector<2x4x1024xf32>
    %45 = vector.broadcast %43 : vector<2x1x1024xf32> to vector<2x4x1024xf32>
    %46 = arith.mulf %44, %45 : vector<2x4x1024xf32>
    %47 = arith.addf %41, %46 : vector<2x4x1024xf32>
    %48 = vector.extract_strided_slice %30 {offsets = [0, 0, 3], sizes = [2, 4, 1], strides = [1, 1, 1]} : vector<2x4x4xf32> to vector<2x4x1xf32>
    %49 = vector.extract_strided_slice %0 {offsets = [0, 3, 0], sizes = [2, 1, 1024], strides = [1, 1, 1]} : vector<2x4x1024xf32> to vector<2x1x1024xf32>
    %50 = vector.broadcast %48 : vector<2x4x1xf32> to vector<2x4x1024xf32>
    %51 = vector.broadcast %49 : vector<2x1x1024xf32> to vector<2x4x1024xf32>
    %52 = arith.mulf %50, %51 : vector<2x4x1024xf32>
    %53 = arith.addf %47, %52 : vector<2x4x1024xf32>
    %cst_7 = arith.constant 0.00999999977 : f32
    %54 = vector.broadcast %cst_7 : f32 to vector<2x4x1024xf32>
    %55 = arith.mulf %54, %53 : vector<2x4x1024xf32>
    %56 = arith.addf %55, %0 : vector<2x4x1024xf32>
    %c0_8 = arith.constant 0 : index
    %c0_9 = arith.constant 0 : index
    %c0_10 = arith.constant 0 : index
    %57 = vector.load %arg2[%c0_8, %c0_9, %c0_10] : memref<2x4x1024xf32, #tpu.memory_space<vmem>>, vector<2x4x1024xf32>
    tpu.vector_store %arg2[%c0_8, %c0_9, %c0_10], %56 {strides = array<i32>} : memref<2x4x1024xf32, #tpu.memory_space<vmem>>, vector<2x4x1024xf32>,
    return
  }
  func.func @transform_0(%arg0: i32) -> (i32, i32, i32) {
    %c0_i32 = arith.constant 0 : i32
    %c0_i32_0 = arith.constant 0 : i32
    %c0_i32_1 = arith.constant 0 : i32
    return %arg0, %c0_i32, %c0_i32_0 : i32, i32, i32
  }
  func.func @transform_1(%arg0: i32) -> (i32, i32, i32) {
    %c0_i32 = arith.constant 0 : i32
    %c0_i32_0 = arith.constant 0 : i32
    %c0_i32_1 = arith.constant 0 : i32
    return %arg0, %c0_i32, %c0_i32_0 : i32, i32, i32
  }
}

</mosaic_0001>

<bundles_post_ra>
// kernel: tpu_custom_call.1
= control target key start
LH: loop header
LB: loop body
LE: loop exit
PB: predicated region body
PF: predicated region fallthrough
CT: control target
= control target key end

     0   :  { %6 = vsyncpa [#allocation3], 0  ;;  %s1950_s0 = inlined_call_operand.hbm [shape: f32[2,4,1024], index: 0, kind: input, shape index: {}, may-alias: {0,1}]   ;;  %s1951_s1 = inlined_call_operand.hbm [shape: f32[2,4,1024], index: 1, kind: output, shape index: {}, may-alias: {0,1}]  }
   0x1   :  { %7 = vsyncpa [#allocation4], 0  ;;  %s1227_s6 = smov [#allocation2]  }
   0x2   :  { %s13_s7 = sshll.u32 %s1227_s6, 4  ;;  %s14_s7 = int_to_ptr.vmem [resolvable:$true] %s13_s7 }
   0x3   :  { %s1191_s8 = scalar_lea.vmem %s14_s7, 1024  ;;  %p1196_p1 = scmp.lt.s32.totalorder %s14_s7, %s14_s7 }
   0x4   :  { %p1192_p0 = scmp.ne.s32.totalorder %s14_s7, %s1191_s8  ;;  %p1197_p2 = scmp.lt.s32.totalorder %s1191_s8, %s1191_s8 }
   0x6   :  { %p1198_p3 = por %p1197_p2, %p1196_p1 }
   0x8   :  { %p1199_p4 = pnand %p1198_p3, %p1192_p0 }
   0xa   :  { %1202 = shalt.err (!%p1199_p4)
}
   0xb   :  { %s1228_s9 = smov 512   ;;  %s1229_s10 = smov 32  }
   0xc   :  { %19 = dma.hbm_to_vmem [thread:$0]  %s1950_s0, 1024, %s14_s7, [#allocation3], %s1228_s9, %s1228_s9, %s1229_s10  }
   0xd   :  { %1223 = dma.done.wait [#allocation3], 1024  }
   0xe   :  { %1224 = vsyncadd [#allocation3], 4294966272  ;;  %v39_v0 = vlaneseq  ;;  %vm215_vm0 = vcmask 1043456   ;;  %v1265_v7 = vld [vmem:[#allocation2] sm:$0xff]  ;;  %v1267_v8 = vld [vmem:[#allocation2 + $0x8] sm:$0xff]  ;;  %vm885_vm1 = vcmask 1041408  }
   0xf   :  { %v1269_v9 = vld [vmem:[#allocation2 + $0x10] sm:$0xff]  ;;  %v1280_v13 = vld [vmem:[#allocation2 + $0x18] sm:$0xff]  ;;  %v1284_v14 = vcombine.high %v1265_v7, %v1265_v7  ;;  %v1288_v15 = vcombine.high %v1267_v8, %v1267_v8  ;;  %vm882_vm2 = vcmask 1040384   ;;  %vm888_vm3 = vcmask 1042432   ;;  %s1234_s0 = smov [#allocation5]  }
  0x10   :  { %v1251_v1 = vshrl.u32 %v39_v0, 7  ;;  %v835_v2 = vand.u32 127, %v39_v0  ;;  %v1292_v16 = vcombine.high %v1269_v9, %v1269_v9  ;;  %v1298_v18 = vcombine.high %v1280_v13, %v1280_v13  ;;  %s1137_s13 = sshll.u32 %s1234_s0, 4  ;;  %s1138_s13 = int_to_ptr.vmem [resolvable:$true] %s1137_s13 }
  0x11   :  { %vm891_vm4 = vcmask 27648   ;;  %s1203_s14 = scalar_lea.vmem %s1138_s13, 1024  ;;  %p1208_p6 = scmp.lt.s32.totalorder %s1138_s13, %s1138_s13 }
  0x12   :  { %v1254_v3 = vsub.s32 1, %v1251_v1  ;;  %v1257_v4 = vsub.s32 5, %v1251_v1  ;;  %v1260_v5 = vsub.s32 0, %v1251_v1  ;;  %v1263_v6 = vsub.s32 %v835_v2, %v1251_v1  ;;  %p1204_p5 = scmp.ne.s32.totalorder %s1138_s13, %s1203_s14  ;;  %p1209_p7 = scmp.lt.s32.totalorder %s1203_s14, %s1203_s14 }
  0x13   :  { %v1272_v10 = vsub.s32 2, %v1251_v1  ;;  %v1275_v11 = vsub.s32 3, %v1251_v1  ;;  %v1278_v12 = vsub.s32 4, %v1251_v1  ;;  %v1353_v41 = vsub.s32 6, %v1251_v1 }
  0x14   :  { %v253_v17 = vrot.slane %v1265_v7, %v1254_v3  ;;  %v257_v19 = vrot.slane %v1265_v7, %v1257_v4  ;;  %v261_v20 = vrot.slane %v1267_v8, %v1254_v3  ;;  %v265_v21 = vrot.slane %v1267_v8, %v1257_v4  ;;  %p1210_p8 = por %p1209_p7, %p1208_p6 }
  0x15   :  { %v269_v22 = vrot.slane %v1269_v9, %v1254_v3  ;;  %v273_v23 = vrot.slane %v1269_v9, %v1257_v4  ;;  %v277_v24 = vrot.slane %v1280_v13, %v1254_v3  ;;  %v281_v25 = vrot.slane %v1280_v13, %v1257_v4 }
  0x16   :  { %v1315_v26 = vrot.slane %v253_v17, %v1254_v3  ;;  %v1318_v27 = vrot.slane %v257_v19, %v1254_v3  ;;  %v1321_v28 = vrot.slane %v261_v20, %v1254_v3  ;;  %v1324_v29 = vrot.slane %v265_v21, %v1254_v3  ;;  %p1211_p9 = pnand %p1210_p8, %p1204_p5 }
  0x17   :  { %v1327_v30 = vrot.slane %v269_v22, %v1254_v3  ;;  %v1330_v31 = vrot.slane %v273_v23, %v1254_v3  ;;  %v1333_v32 = vrot.slane %v277_v24, %v1254_v3  ;;  %v1336_v33 = vrot.slane %v281_v25, %v1254_v3 }
  0x18   :  { %v394_v34 = vmul.f32 %v1315_v26, %v1265_v7  ;;  %v395_v35 = vmul.f32 %v1318_v27, %v1284_v14  ;;  %v396_v36 = vmul.f32 %v1321_v28, %v1267_v8  ;;  %v397_v37 = vmul.f32 %v1324_v29, %v1288_v15 }
  0x19   :  { %1989 = vst [vmem:[#allocation8_spill] sm:$0xff] %v1327_v30  ;;  %1990 = vst [vmem:[#allocation9_spill] sm:$0xff] %v1330_v31  ;;  %v398_v38 = vmul.f32 %v1327_v30, %v1269_v9  ;;  %v399_v39 = vmul.f32 %v1330_v31, %v1292_v16  ;;  %v400_v40 = vmul.f32 %v1333_v32, %v1280_v13 }
  0x1a   :  { %1991 = vst [vmem:[#allocation10_spill] sm:$0xff] %v1333_v32  ;;  %1992 = vst [vmem:[#allocation11_spill] sm:$0xff] %v1336_v33  ;;  %v401_v42 = vmul.f32 %v1336_v33, %v1298_v18  ;;  %v410_v43 = vsel %vm215_vm0, %v394_v34, 0.0  ;;  %v411_v44 = vsel %vm215_vm0, %v395_v35, 0.0  ;;  %v413_v45 = vsel %vm215_vm0, %v396_v36, 0.0 }
  0x1b   :  { %v412_v46 = vadd.f32 %v411_v44, %v410_v43  ;;  %v415_v47 = vsel %vm215_vm0, %v397_v37, 0.0  ;;  %v417_v48 = vsel %vm215_vm0, %v398_v38, 0.0  ;;  %v419_v49 = vsel %vm215_vm0, %v399_v39, 0.0 }
  0x1c   :  { %v421_v50 = vsel %vm215_vm0, %v400_v40, 0.0  ;;  %v42_v51 = vrot.slane %v1265_v7, %v1260_v5  ;;  %v46_v52 = vrot.slane %v1265_v7, %v1278_v12  ;;  %v50_v53 = vrot.slane %v1267_v8, %v1260_v5 }
  0x1d   :  { %v414_v54 = vadd.f32 %v413_v45, %v412_v46  ;;  %v54_v55 = vrot.slane %v1267_v8, %v1278_v12  ;;  %v58_v56 = vrot.slane %v1269_v9, %v1260_v5  ;;  %v62_v57 = vrot.slane %v1269_v9, %v1278_v12 }
  0x1e   :  { %v66_v58 = vrot.slane %v1280_v13, %v1260_v5  ;;  %v70_v59 = vrot.slane %v1280_v13, %v1278_v12  ;;  %v1381_v60 = vrot.slane %v42_v51, %v1260_v5  ;;  %v1384_v61 = vrot.slane %v46_v52, %v1260_v5 }
  0x1f   :  { %v416_v62 = vadd.f32 %v415_v47, %v414_v54  ;;  %v1387_v63 = vrot.slane %v50_v53, %v1260_v5  ;;  %v1390_v0 = vrot.slane %v54_v55, %v1260_v5  ;;  %v1393_v2 = vrot.slane %v58_v56, %v1260_v5  ;;  %v1426_v47 = vld [vmem:[#allocation2 + $0x20] sm:$0xff]  ;;  %v1432_v53 = vld [vmem:[#allocation2 + $0x30] sm:$0xff]  ;;  %v1434_v54 = vld [vmem:[#allocation2 + $0x38] sm:$0xff] }
  0x20   :  { %v1396_v17 = vrot.slane %v62_v57, %v1260_v5  ;;  %v1399_v19 = vrot.slane %v66_v58, %v1260_v5  ;;  %v1402_v20 = vrot.slane %v70_v59, %v1260_v5  ;;  %v199_v21 = vmul.f32 %v1381_v60, %v1265_v7  ;;  %1993 = vst [vmem:[#allocation12_spill] sm:$0xff] %v1426_v47 }
  0x21   :  { %v418_v22 = vadd.f32 %v417_v48, %v416_v62  ;;  %v200_v23 = vmul.f32 %v1284_v14, %v1384_v61  ;;  %v201_v24 = vmul.f32 %v1387_v63, %v1267_v8  ;;  %v202_v25 = vmul.f32 %v1288_v15, %v1390_v0  ;;  %v1428_v48 = vld [vmem:[#allocation2 + $0x28] sm:$0xff]  ;;  %1995 = vst [vmem:[#allocation14_spill] sm:$0xff] %v1432_v53 }
  0x22   :  { %v423_v34 = vsel %vm215_vm0, %v401_v42, 0.0  ;;  %v203_v35 = vmul.f32 %v1393_v2, %v1269_v9  ;;  %v204_v36 = vmul.f32 %v1292_v16, %v1396_v17  ;;  %v205_v37 = vmul.f32 %v1399_v19, %v1280_v13  ;;  %1994 = vst [vmem:[#allocation13_spill] sm:$0xff] %v1428_v48  ;;  %1996 = vst [vmem:[#allocation15_spill] sm:$0xff] %v1434_v54 }
  0x23   :  { %v420_v38 = vadd.f32 %v419_v49, %v418_v22  ;;  %v216_v39 = vsel %vm215_vm0, %v199_v21, 0.0  ;;  %v217_v40 = vsel %vm215_vm0, %v200_v23, 0.0  ;;  %v219_v43 = vsel %vm215_vm0, %v201_v24, 0.0 }
  0x24   :  { %v206_v44 = vmul.f32 %v1298_v18, %v1402_v20  ;;  %v218_v42 = vadd.f32 %v217_v40, %v216_v39  ;;  %v221_v45 = vsel %vm215_vm0, %v202_v25, 0.0  ;;  %v223_v46 = vsel %vm215_vm0, %v203_v35, 0.0 }
  0x25   :  { %v422_v51 = vadd.f32 %v421_v50, %v420_v38  ;;  %v225_v49 = vsel %vm215_vm0, %v204_v36, 0.0  ;;  %v227_v52 = vsel %vm215_vm0, %v205_v37, 0.0  ;;  %v1438_v55 = vcombine.high %v1426_v47, %v1426_v47 }
  0x26   :  { %v220_v56 = vadd.f32 %v219_v43, %v218_v42  ;;  %v1442_v57 = vcombine.high %v1428_v48, %v1428_v48  ;;  %v1446_v50 = vcombine.high %v1432_v53, %v1432_v53  ;;  %v1450_v58 = vcombine.high %v1434_v54, %v1434_v54 }
  0x27   :  { %1997 = vst [vmem:[#allocation16_spill] sm:$0xff] %v1438_v55  ;;  %v424_v59 = vadd.f32 %v423_v34, %v422_v51  ;;  %v285_v62 = vrot.slane %v1426_v47, %v1254_v3  ;;  %v289_v21 = vrot.slane %v1426_v47, %v1257_v4  ;;  %v293_v22 = vrot.slane %v1428_v48, %v1254_v3 }
  0x28   :  { %1998 = vst [vmem:[#allocation17_spill] sm:$0xff] %v1442_v57  ;;  %1999 = vst [vmem:[#allocation18_spill] sm:$0xff] %v1446_v50  ;;  %v222_v23 = vadd.f32 %v221_v45, %v220_v56  ;;  %v297_v24 = vrot.slane %v1428_v48, %v1257_v4  ;;  %v301_v25 = vrot.slane %v1432_v53, %v1254_v3 }
  0x29   :  { %2000 = vst [vmem:[#allocation19_spill] sm:$0xff] %v1450_v58  ;;  %v305_v35 = vrot.slane %v1432_v53, %v1257_v4  ;;  %425 = vadd.xlane.f32.xlu1 %v424_v59  ;;  %v309_v34 = vrot.slane %v1434_v54, %v1254_v3  ;;  %v313_v36 = vrot.slane %v1434_v54, %v1257_v4 }
  0x2a   :  { %v1469_v37 = vrot.slane %v285_v62, %v1254_v3  ;;  %v1472_v38 = vrot.slane %v289_v21, %v1254_v3  ;;  %v224_v39 = vadd.f32 %v223_v46, %v222_v23  ;;  %v1475_v40 = vrot.slane %v293_v22, %v1254_v3 }
  0x2b   :  { %v1478_v43 = vrot.slane %v297_v24, %v1254_v3  ;;  %v1481_v42 = vrot.slane %v301_v25, %v1254_v3  ;;  %v1484_v45 = vrot.slane %v305_v35, %v1254_v3  ;;  %v1487_v4 = vrot.slane %v309_v34, %v1254_v3 }
  0x2c   :  { %2001 = vst [vmem:[#allocation20_spill] sm:$0xff] %v1469_v37  ;;  %2002 = vst [vmem:[#allocation21_spill] sm:$0xff] %v1472_v38  ;;  %v1490_v51 = vrot.slane %v313_v36, %v1254_v3  ;;  %v402_v46 = vmul.f32 %v1469_v37, %v1426_v47  ;;  %v226_v56 = vadd.f32 %v225_v49, %v224_v39  ;;  %v229_v22 = vsel %vm215_vm0, %v206_v44, 0.0 }
  0x2d   :  { %2003 = vst [vmem:[#allocation22_spill] sm:$0xff] %v1475_v40  ;;  %2004 = vst [vmem:[#allocation23_spill] sm:$0xff] %v1478_v43  ;;  %v403_v59 = vmul.f32 %v1472_v38, %v1438_v55  ;;  %v404_v62 = vmul.f32 %v1475_v40, %v1428_v48  ;;  %v405_v21 = vmul.f32 %v1478_v43, %v1442_v57 }
  0x2e   :  { %2005 = vst [vmem:[#allocation24_spill] sm:$0xff] %v1481_v42  ;;  %2006 = vst [vmem:[#allocation25_spill] sm:$0xff] %v1484_v45  ;;  %v406_v23 = vmul.f32 %v1481_v42, %v1432_v53  ;;  %v407_v3 = vmul.f32 %v1484_v45, %v1446_v50  ;;  %v408_v49 = vmul.f32 %v1487_v4, %v1434_v54  ;;  %v427_v25 = vsel %vm215_vm0, %v402_v46, 0.0 }
  0x2f   :  { %2007 = vst [vmem:[#allocation26_spill] sm:$0xff] %v1487_v4  ;;  %2008 = vst [vmem:[#allocation27_spill] sm:$0xff] %v1490_v51  ;;  %v228_v24 = vadd.f32 %v227_v52, %v226_v56  ;;  %v428_v35 = vsel %vm215_vm0, %v403_v59, 0.0  ;;  %v430_v34 = vsel %vm215_vm0, %v404_v62, 0.0  ;;  %v409_v36 = vmul.f32 %v1490_v51, %v1450_v58 }
  0x30   :  { %v429_v44 = vadd.f32 %v428_v35, %v427_v25  ;;  %v432_v39 = vsel %vm215_vm0, %v405_v21, 0.0  ;;  %v434_v42 = vsel %vm215_vm0, %v406_v23, 0.0  ;;  %v436_v45 = vsel %vm215_vm0, %v407_v3, 0.0 }
  0x31   :  { %v230_v43 = vadd.f32 %v229_v22, %v228_v24  ;;  %v438_v4 = vsel %vm215_vm0, %v408_v49, 0.0  ;;  %v74_v52 = vrot.slane %v1426_v47, %v1260_v5  ;;  %v78_v56 = vrot.slane %v1426_v47, %v1278_v12 }
  0x32   :  { %v431_v46 = vadd.f32 %v430_v34, %v429_v44  ;;  %v82_v59 = vrot.slane %v1428_v48, %v1260_v5  ;;  %v86_v62 = vrot.slane %v1428_v48, %v1278_v12  ;;  %v90_v21 = vrot.slane %v1432_v53, %v1260_v5 }
  0x33   :  { %231 = vadd.xlane.f32.xlu0 %v230_v43  ;;  %v94_v22 = vrot.slane %v1432_v53, %v1278_v12  ;;  %v98_v23 = vrot.slane %v1434_v54, %v1260_v5  ;;  %v102_v3 = vrot.slane %v1434_v54, %v1278_v12  ;;  %v1533_v24 = vrot.slane %v74_v52, %v1260_v5 }
  0x34   :  { %v433_v49 = vadd.f32 %v432_v39, %v431_v46  ;;  %v1536_v25 = vrot.slane %v78_v56, %v1260_v5  ;;  %v1539_v43 = vrot.slane %v82_v59, %v1260_v5  ;;  %v1542_v35 = vrot.slane %v86_v62, %v1260_v5 }
  0x35   :  { %v1545_v34 = vrot.slane %v90_v21, %v1260_v5  ;;  %v1548_v44 = vrot.slane %v94_v22, %v1260_v5  ;;  %v1551_v12 = vrot.slane %v98_v23, %v1260_v5  ;;  %v1554_v52 = vrot.slane %v102_v3, %v1260_v5 }
  0x36   :  { %v435_v39 = vadd.f32 %v434_v42, %v433_v49  ;;  %v207_v46 = vmul.f32 %v1533_v24, %v1426_v47  ;;  %v208_v56 = vmul.f32 %v1438_v55, %v1536_v25  ;;  %v209_v59 = vmul.f32 %v1539_v43, %v1428_v48 }
  0x37   :  { %v210_v62 = vmul.f32 %v1442_v57, %v1542_v35  ;;  %v211_v21 = vmul.f32 %v1545_v34, %v1432_v53  ;;  %v212_v42 = vmul.f32 %v1446_v50, %v1548_v44  ;;  %v440_v22 = vsel %vm215_vm0, %v409_v36, 0.0 }
  0x38   :  { %v437_v5 = vadd.f32 %v436_v45, %v435_v39  ;;  %v213_v23 = vmul.f32 %v1551_v12, %v1434_v54  ;;  %v233_v3 = vsel %vm215_vm0, %v207_v46, 0.0  ;;  %v214_v49 = vmul.f32 %v1450_v58, %v1554_v52 }
  0x39   :  { %v234_v51 = vsel %vm215_vm0, %v208_v56, 0.0  ;;  %v236_v40 = vsel %vm215_vm0, %v209_v59, 0.0  ;;  %v238_v38 = vsel %vm215_vm0, %v210_v62, 0.0  ;;  %v240_v45 = vsel %vm215_vm0, %v211_v21, 0.0 }
  0x3a   :  { %v439_v37 = vadd.f32 %v438_v4, %v437_v5  ;;  %v235_v33 = vadd.f32 %v234_v51, %v233_v3  ;;  %v242_v36 = vsel %vm215_vm0, %v212_v42, 0.0  ;;  %v244_v39 = vsel %vm215_vm0, %v213_v23, 0.0 }
  0x3b   :  { %v479_v46 = vrot.slane %v1426_v47, %v1272_v10  ;;  %v483_v32 = vrot.slane %v1426_v47, %v1353_v41  ;;  %v487_v56 = vrot.slane %v1428_v48, %v1272_v10  ;;  %v491_v4 = vrot.slane %v1428_v48, %v1353_v41 }
  0x3c   :  { %v441_v59 = vadd.f32 %v440_v22, %v439_v37  ;;  %v237_v31 = vadd.f32 %v236_v40, %v235_v33  ;;  %v495_v51 = vrot.slane %v1432_v53, %v1272_v10  ;;  %v499_v62 = vrot.slane %v1432_v53, %v1353_v41 }
  0x3d   :  { %v503_v21 = vrot.slane %v1434_v54, %v1272_v10  ;;  %v507_v42 = vrot.slane %v1434_v54, %v1353_v41  ;;  %v1597_v5 = vrot.slane %v479_v46, %v1272_v10  ;;  %v1600_v37 = vrot.slane %v483_v32, %v1272_v10 }
  0x3e   :  { %442 = vadd.xlane.f32.xlu1 %v441_v59  ;;  %v239_v33 = vadd.f32 %v238_v38, %v237_v31  ;;  %v1603_v40 = vrot.slane %v487_v56, %v1272_v10  ;;  %v1606_v22 = vrot.slane %v491_v4, %v1272_v10  ;;  %v1609_v23 = vrot.slane %v495_v51, %v1272_v10 }
  0x3f   :  { %2009 = vst [vmem:[#allocation28_spill] sm:$0xff] %v1597_v5  ;;  %2010 = vst [vmem:[#allocation29_spill] sm:$0xff] %v1600_v37  ;;  %v1612_v3 = vrot.slane %v499_v62, %v1272_v10  ;;  %v1615_v46 = vrot.slane %v503_v21, %v1272_v10  ;;  %v1618_v31 = vrot.slane %v507_v42, %v1272_v10  ;;  %v246_v42 = vsel %vm215_vm0, %v214_v49, 0.0 }
  0x40   :  { %2011 = vst [vmem:[#allocation30_spill] sm:$0xff] %v1603_v40  ;;  %2012 = vst [vmem:[#allocation31_spill] sm:$0xff] %v1606_v22  ;;  %v241_v32 = vadd.f32 %v240_v45, %v239_v33  ;;  %v596_v38 = vmul.f32 %v1597_v5, %v1426_v47  ;;  %v597_v56 = vmul.f32 %v1600_v37, %v1438_v55 }
  0x41   :  { %2013 = vst [vmem:[#allocation32_spill] sm:$0xff] %v1609_v23  ;;  %2014 = vst [vmem:[#allocation33_spill] sm:$0xff] %v1612_v3  ;;  %v598_v59 = vmul.f32 %v1603_v40, %v1428_v48  ;;  %v599_v4 = vmul.f32 %v1606_v22, %v1442_v57  ;;  %v600_v51 = vmul.f32 %v1609_v23, %v1432_v53 }
  0x42   :  { %2015 = vst [vmem:[#allocation34_spill] sm:$0xff] %v1615_v46  ;;  %2016 = vst [vmem:[#allocation35_spill] sm:$0xff] %v1618_v31  ;;  %v601_v62 = vmul.f32 %v1612_v3, %v1446_v50  ;;  %v602_v45 = vmul.f32 %v1615_v46, %v1434_v54  ;;  %v243_v21 = vadd.f32 %v242_v36, %v241_v32  ;;  %v621_v33 = vsel %vm215_vm0, %v596_v38, 0.0 }
  0x43   :  { %v622_v37 = vsel %vm215_vm0, %v597_v56, 0.0  ;;  %v603_v40 = vmul.f32 %v1618_v31, %v1450_v58  ;;  %v624_v5 = vsel %vm215_vm0, %v598_v59, 0.0  ;;  %v626_v23 = vsel %vm215_vm0, %v599_v4, 0.0 }
  0x44   :  { %v623_v22 = vadd.f32 %v622_v37, %v621_v33  ;;  %v245_v30 = vadd.f32 %v244_v39, %v243_v21  ;;  %v628_v3 = vsel %vm215_vm0, %v600_v51, 0.0  ;;  %v630_v46 = vsel %vm215_vm0, %v601_v62, 0.0 }
  0x45   :  { %v632_v36 = vsel %vm215_vm0, %v602_v45, 0.0  ;;  %v447_v32 = vrot.slane %v1265_v7, %v1272_v10  ;;  %v451_v38 = vrot.slane %v1265_v7, %v1353_v41  ;;  %v455_v37 = vrot.slane %v1267_v8, %v1272_v10 }
  0x46   :  { %v625_v49 = vadd.f32 %v624_v5, %v623_v22  ;;  %v247_v56 = vadd.f32 %v246_v42, %v245_v30  ;;  %v459_v39 = vrot.slane %v1267_v8, %v1353_v41  ;;  %v463_v59 = vrot.slane %v1269_v9, %v1272_v10 }
  0x47   :  { %v467_v4 = vrot.slane %v1269_v9, %v1353_v41  ;;  %v471_v22 = vrot.slane %v1280_v13, %v1272_v10  ;;  %v475_v51 = vrot.slane %v1280_v13, %v1353_v41  ;;  %v1661_v62 = vrot.slane %v447_v32, %v1272_v10 }
  0x48   :  { %v627_v5 = vadd.f32 %v626_v23, %v625_v49  ;;  %248 = vadd.xlane.f32.xlu0 %v247_v56  ;;  %v1664_v30 = vrot.slane %v451_v38, %v1272_v10  ;;  %v1667_v45 = vrot.slane %v455_v37, %v1272_v10  ;;  %v1670_v21 = vrot.slane %v459_v39, %v1272_v10 }
  0x49   :  { %v1673_v23 = vrot.slane %v463_v59, %v1272_v10  ;;  %v1676_v33 = vrot.slane %v467_v4, %v1272_v10  ;;  %v1679_v41 = vrot.slane %v471_v22, %v1272_v10  ;;  %v1682_v49 = vrot.slane %v475_v51, %v1272_v10 }
  0x4a   :  { %v629_v42 = vadd.f32 %v628_v3, %v627_v5  ;;  %v588_v32 = vmul.f32 %v1661_v62, %v1265_v7  ;;  %v589_v38 = vmul.f32 %v1664_v30, %v1284_v14  ;;  %v590_v37 = vmul.f32 %v1667_v45, %v1267_v8 }
  0x4b   :  { %2017 = vst [vmem:[#allocation36_spill] sm:$0xff] %v1673_v23  ;;  %2018 = vst [vmem:[#allocation37_spill] sm:$0xff] %v1676_v33  ;;  %v591_v3 = vmul.f32 %v1670_v21, %v1288_v15  ;;  %v592_v39 = vmul.f32 %v1673_v23, %v1269_v9  ;;  %v1695_v59 = vsub.s32 7, %v1251_v1  ;;  %v634_v10 = vsel %vm215_vm0, %v603_v40, 0.0 }
  0x4c   :  { %2019 = vst [vmem:[#allocation38_spill] sm:$0xff] %v1679_v41  ;;  %2020 = vst [vmem:[#allocation39_spill] sm:$0xff] %v1682_v49  ;;  %v631_v56 = vadd.f32 %v630_v46, %v629_v42  ;;  %v604_v4 = vsel %vm215_vm0, %v588_v32, 0.0  ;;  %v605_v5 = vsel %vm215_vm0, %v589_v38, 0.0  ;;  %v607_v22 = vsel %vm215_vm0, %v590_v37, 0.0 }
  0x4d   :  { %v593_v31 = vmul.f32 %v1676_v33, %v1292_v16  ;;  %v594_v46 = vmul.f32 %v1679_v41, %v1280_v13  ;;  %v606_v42 = vadd.f32 %v605_v5, %v604_v4  ;;  %v595_v1 = vmul.f32 %v1682_v49, %v1298_v18 }
  0x4e   :  { %v633_v51 = vadd.f32 %v632_v36, %v631_v56  ;;  %v609_v23 = vsel %vm215_vm0, %v591_v3, 0.0  ;;  %v611_v40 = vsel %vm215_vm0, %v592_v39, 0.0  ;;  %v673_v32 = vrot.slane %v1426_v47, %v1275_v11 }
  0x4f   :  { %v608_v37 = vadd.f32 %v607_v22, %v606_v42  ;;  %v677_v36 = vrot.slane %v1426_v47, %v1695_v59  ;;  %v681_v56 = vrot.slane %v1428_v48, %v1275_v11  ;;  %v685_v4 = vrot.slane %v1428_v48, %v1695_v59 }
  0x50   :  { %v635_v38 = vadd.f32 %v634_v10, %v633_v51  ;;  %v689_v5 = vrot.slane %v1432_v53, %v1275_v11  ;;  %v693_v3 = vrot.slane %v1432_v53, %v1695_v59  ;;  %v697_v39 = vrot.slane %v1434_v54, %v1275_v11 }
  0x51   :  { %v610_v10 = vadd.f32 %v609_v23, %v608_v37  ;;  %v701_v22 = vrot.slane %v1434_v54, %v1695_v59  ;;  %v1726_v51 = vrot.slane %v673_v32, %v1275_v11  ;;  %v1729_v42 = vrot.slane %v677_v36, %v1275_v11 }
  0x52   :  { %636 = vadd.xlane.f32.xlu1 %v635_v38  ;;  %v613_v49 = vsel %vm215_vm0, %v593_v31, 0.0  ;;  %v1733_v41 = vrot.slane %v681_v56, %v1275_v11  ;;  %v1736_v33 = vrot.slane %v685_v4, %v1275_v11  ;;  %v1739_v38 = vrot.slane %v689_v5, %v1275_v11 }
  0x53   :  { %2021 = vst [vmem:[#allocation40_spill] sm:$0xff] %v1729_v42  ;;  %v612_v23 = vadd.f32 %v611_v40, %v610_v10  ;;  %v615_v37 = vsel %vm215_vm0, %v594_v46, 0.0  ;;  %v1743_v32 = vrot.slane %v693_v3, %v1275_v11  ;;  %v790_v36 = vmul.f32 %v1726_v51, %v1426_v47 }
  0x54   :  { %2022 = vst [vmem:[#allocation41_spill] sm:$0xff] %v1739_v38  ;;  %v1748_v31 = vrot.slane %v697_v39, %v1275_v11  ;;  %v791_v56 = vmul.f32 %v1729_v42, %v1438_v55  ;;  %v792_v4 = vmul.f32 %v1733_v41, %v1428_v48  ;;  %v793_v40 = vmul.f32 %v1736_v33, %v1442_v57 }
  0x55   :  { %2023 = vst [vmem:[#allocation42_spill] sm:$0xff] %v1743_v32  ;;  %v614_v5 = vadd.f32 %v613_v49, %v612_v23  ;;  %v617_v46 = vsel %vm215_vm0, %v595_v1, 0.0  ;;  %v1758_v3 = vrot.slane %v701_v22, %v1275_v11  ;;  %v794_v10 = vmul.f32 %v1739_v38, %v1432_v53 }
  0x56   :  { %2024 = vst [vmem:[#allocation43_spill] sm:$0xff] %v1748_v31  ;;  %v815_v39 = vsel %vm215_vm0, %v790_v36, 0.0  ;;  %v816_v47 = vsel %vm215_vm0, %v791_v56, 0.0  ;;  %v818_v55 = vsel %vm215_vm0, %v792_v4, 0.0  ;;  %v795_v48 = vmul.f32 %v1743_v32, %v1446_v50 }
  0x57   :  { %2025 = vst [vmem:[#allocation44_spill] sm:$0xff] %v1758_v3  ;;  %v616_v42 = vadd.f32 %v615_v37, %v614_v5  ;;  %v817_v57 = vadd.f32 %v816_v47, %v815_v39  ;;  %v796_v49 = vmul.f32 %v1748_v31, %v1434_v54  ;;  %v820_v1 = vsel %vm215_vm0, %v793_v40, 0.0 }
  0x58   :  { %v641_v22 = vrot.slane %v1265_v7, %v1275_v11  ;;  %v645_v23 = vrot.slane %v1265_v7, %v1695_v59  ;;  %v649_v37 = vrot.slane %v1267_v8, %v1275_v11  ;;  %v653_v4 = vrot.slane %v1267_v8, %v1695_v59 }
  0x59   :  { %v618_v36 = vadd.f32 %v617_v46, %v616_v42  ;;  %v819_v56 = vadd.f32 %v818_v55, %v817_v57  ;;  %v797_v47 = vmul.f32 %v1758_v3, %v1450_v58  ;;  %v822_v5 = vsel %vm215_vm0, %v794_v10, 0.0 }
  0x5a   :  { %v657_v40 = vrot.slane %v1269_v9, %v1275_v11  ;;  %v661_v39 = vrot.slane %v1269_v9, %v1695_v59  ;;  %v1786_v55 = vrot.slane %v641_v22, %v1275_v11  ;;  %v1789_v57 = vrot.slane %v645_v23, %v1275_v11 }
  0x5b   :  { %619 = vadd.xlane.f32.xlu0 %v618_v36  ;;  %v821_v42 = vadd.f32 %v820_v1, %v819_v56  ;;  %v1792_v46 = vrot.slane %v649_v37, %v1275_v11  ;;  %v824_v58 = vsel %vm215_vm0, %v795_v48, 0.0  ;;  %v665_v10 = vrot.slane %v1280_v13, %v1275_v11 }
  0x5c   :  { %v1798_v54 = vrot.slane %v653_v4, %v1275_v11  ;;  %v1801_v36 = vrot.slane %v657_v40, %v1275_v11  ;;  %v826_v22 = vsel %vm215_vm0, %v796_v49, 0.0  ;;  %v782_v23 = vmul.f32 %v1786_v55, %v1265_v7 }
  0x5d   :  { %v823_v1 = vadd.f32 %v822_v5, %v821_v42  ;;  %v783_v56 = vmul.f32 %v1789_v57, %v1284_v14  ;;  %v669_v48 = vrot.slane %v1280_v13, %v1695_v59  ;;  %v1811_v37 = vrot.slane %v661_v39, %v1275_v11 }
  0x5e   :  { %v784_v4 = vmul.f32 %v1792_v46, %v1267_v8  ;;  %v785_v5 = vmul.f32 %v1798_v54, %v1288_v15  ;;  %v828_v49 = vsel %vm215_vm0, %v797_v47, 0.0  ;;  %v798_v7 = vsel %vm215_vm0, %v782_v23, 0.0 }
  0x5f   :  { %v825_v40 = vadd.f32 %v824_v58, %v823_v1  ;;  %v1820_v42 = vrot.slane %v665_v10, %v1275_v11  ;;  %v786_v59 = vmul.f32 %v1801_v36, %v1269_v9  ;;  %v799_v39 = vsel %vm215_vm0, %v783_v56, 0.0 }
  0x60   :  { %v801_v50 = vsel %vm215_vm0, %v784_v4, 0.0  ;;  %v800_v8 = vadd.f32 %v799_v39, %v798_v7  ;;  %v1827_v3 = vrot.slane %v669_v48, %v1275_v11  ;;  %v787_v58 = vmul.f32 %v1811_v37, %v1292_v16 }
  0x61   :  { %v827_v53 = vadd.f32 %v826_v22, %v825_v40  ;;  %v803_v47 = vsel %vm215_vm0, %v785_v5, 0.0  ;;  %v788_v23 = vmul.f32 %v1820_v42, %v1280_v13  ;;  %v805_v9 = vsel %vm215_vm0, %v786_v59, 0.0 }
  0x62   :  { %v802_v10 = vadd.f32 %v801_v50, %v800_v8  ;;  %v789_v22 = vmul.f32 %v1827_v3, %v1298_v18  ;;  %v807_v11 = vsel %vm215_vm0, %v787_v58, 0.0 }
  0x63   :  { %v829_v1 = vadd.f32 %v828_v49, %v827_v53  ;;  %v809_v4 = vsel %vm215_vm0, %v788_v23, 0.0 }
  0x64   :  { %v804_v56 = vadd.f32 %v803_v47, %v802_v10  ;;  %v811_v5 = vsel %vm215_vm0, %v789_v22, 0.0 }
  0x65   :  { %830 = vadd.xlane.f32.xlu1 %v829_v1 }
  0x66   :  { %v806_v48 = vadd.f32 %v805_v9, %v804_v56 }
  0x68   :  { %v808_v40 = vadd.f32 %v807_v11, %v806_v48 }
  0x6a   :  { %v810_v53 = vadd.f32 %v809_v4, %v808_v40 }
  0x6c   :  { %v812_v50 = vadd.f32 %v811_v5, %v810_v53 }
  0x6e   :  { %813 = vadd.xlane.f32.xlu0 %v812_v50 }
  0xb2   :  { %v426_v49 = vpop.xlane.xlu1 %425 }
  0xb3   :  { %v851_v48 = vrot.slane %v426_v49, %v1263_v6 }
  0xbc   :  { %v232_v13 = vpop.xlane.xlu0 %231 }
  0xbd   :  { %v839_v4 = vrot.slane %v232_v13, %v1263_v6 }
  0xbf   :  { %v883_v53 = vsel %vm882_vm2, %v839_v4, %v851_v48 }
  0xc7   :  { %v443_v7 = vpop.xlane.xlu1 %442 }
  0xc8   :  { %v855_v8 = vrot.slane %v443_v7, %v1263_v6 }
  0xd1   :  { %v249_v59 = vpop.xlane.xlu0 %248 }
  0xd2   :  { %v843_v47 = vrot.slane %v249_v59, %v1263_v6 }
  0xd4   :  { %v884_v10 = vsel %vm882_vm2, %v843_v47, %v855_v8 }
  0xdb   :  { %v637_v39 = vpop.xlane.xlu1 %636 }
  0xdc   :  { %v867_v58 = vrot.slane %v637_v39, %v1263_v6 }
  0xde   :  { %v887_v9 = vsel %vm885_vm1, %v884_v10, %v867_v58 }
  0xe4   :  { %v620_v22 = vpop.xlane.xlu0 %619 }
  0xe5   :  { %v863_v40 = vrot.slane %v620_v22, %v1263_v6  ;;  %v1230_v22 = vmov 0  }
  0xe6   :  { %1158 = vset.pattern.permute.xlu1 %v1230_v22  ;;  %1157 = vset.pattern.permute.xlu0 %v1230_v22 }
  0xe7   :  { %v886_v7 = vsel %vm885_vm1, %v883_v53, %v863_v40  ;;  %v1231_v40 = vmov 1  }
  0xee   :  { %v831_v1 = vpop.xlane.xlu1 %830 }
  0xef   :  { %v879_v23 = vrot.slane %v831_v1, %v1263_v6 }
  0xf1   :  { %v890_v56 = vsel %vm888_vm3, %v887_v9, %v879_v23 }
  0xf2   :  { %v895_v11 = vsel %vm891_vm4, %v890_v56, inf }
  0xf3   :  { %896 = vmin.xlane.f32.xlu1 %v895_v11 }
  0xf7   :  { %v814_v5 = vpop.xlane.xlu0 %813 }
  0xf8   :  { %v875_v50 = vrot.slane %v814_v5, %v1263_v6 }
  0xfa   :  { %v889_v59 = vsel %vm888_vm3, %v886_v7, %v875_v50  ;;  %v1232_v50 = vmov 3   ;;  %v1233_v7 = vmov 2  }
  0xfb   :  { %v892_v39 = vsel %vm891_vm4, %v889_v59, inf }
  0xfc   :  { %893 = vmin.xlane.f32.xlu0 %v892_v39 }
 0x17c   :  { %v897_v8 = vpop.xlane.xlu1 %896 }
 0x17d   :  { %v899_v47 = vsub.f32 %v897_v8, %v890_v56 }
 0x17f   :  { %v902_v58 = vmul.f32 1.442695, %v899_v47 }
 0x181   :  { %1171 = vpow2.f32 %v902_v58 }
 0x185   :  { %v894_v49 = vpop.xlane.xlu0 %893 }
 0x186   :  { %v898_v1 = vsub.f32 %v894_v49, %v889_v59 }
 0x188   :  { %v900_v13 = vmul.f32 1.442695, %v898_v1 }
 0x18a   :  { %1173 = vpow2.f32 %v900_v13 }
 0x18e   :  { %v1172_v10 = vpop.eup %1171 }
 0x18f   :  { %v907_v23 = vsel %vm891_vm4, %v1172_v10, 0.0 }
 0x190   :  { %908 = vadd.xlane.f32.xlu1 %v907_v23 }
 0x197   :  { %v1174_v6 = vpop.eup %1173 }
 0x198   :  { %v904_v9 = vsel %vm891_vm4, %v1174_v6, 0.0 }
 0x199   :  { %905 = vadd.xlane.f32.xlu0 %v904_v9 }
 0x219   :  { %v909_v11 = vpop.xlane.xlu1 %908 }
 0x21a   :  { %1175 = vrcp.f32 %v909_v11  ;;  %v2026_v11 = vld [vmem:[#allocation8_spill] sm:$0xff] }
 0x222   :  { %v906_v56 = vpop.xlane.xlu0 %905 }
 0x223   :  { %1177 = vrcp.f32 %v906_v56  ;;  %v2027_v56 = vld [vmem:[#allocation9_spill] sm:$0xff] }
 0x227   :  { %v1176_v48 = vpop.eup %1175 }
 0x228   :  { %v913_v4 = vmul.f32 %v1176_v48, %v1172_v10  ;;  %v2028_v48 = vld [vmem:[#allocation10_spill] sm:$0xff] }
 0x22a   :  { %921 = vperm.xlu1 %1158, %v913_v4  }
 0x22e   :  { %1159 = vset.pattern.permute.xlu1 %v1231_v40 }
 0x230   :  { %v1178_v5 = vpop.eup %1177 }
 0x231   :  { %v911_v53 = vmul.f32 %v1178_v5, %v1174_v6 }
 0x233   :  { %916 = vperm.xlu0 %1157, %v911_v53   ;;  %941 = vperm.xlu1 %1159, %v911_v53  }
 0x237   :  { %945 = vperm.xlu1 %1159, %v913_v4   ;;  %1162 = vset.pattern.permute.xlu0 %v1232_v50 }
 0x23b   :  { %1160 = vset.pattern.permute.xlu1 %v1233_v7 }
 0x23c   :  { %981 = vperm.xlu1 %1160, %v911_v53  }
 0x240   :  { %985 = vperm.xlu1 %1160, %v913_v4  }
 0x244   :  { %1161 = vset.pattern.permute.xlu1 %v1232_v50 }
 0x245   :  { %1021 = vperm.xlu1 %1161, %v911_v53  }
 0x249   :  { %1025 = vperm.xlu1 %1161, %v913_v4   ;;  %v2029_v4 = vld [vmem:[#allocation11_spill] sm:$0xff] }
 0x2a5   :  { %v922_v59 = vpop.permute.xlu1 %921 }
 0x2a6   :  { %v932_v39 = vmul.f32 %v922_v59, %v1533_v24  ;;  %v933_v8 = vmul.f32 %v922_v59, %v1536_v25  ;;  %v934_v47 = vmul.f32 %v922_v59, %v1539_v43  ;;  %v935_v58 = vmul.f32 %v922_v59, %v1542_v35 }
 0x2a7   :  { %v1861_v49 = vmul.f32 %v922_v59, %v1545_v34  ;;  %v1864_v1 = vmul.f32 %v922_v59, %v1548_v44  ;;  %v1867_v13 = vmul.f32 %v922_v59, %v1551_v12  ;;  %v1870_v10 = vmul.f32 %v922_v59, %v1554_v52 }
 0x2ae   :  { %v917_v23 = vpop.permute.xlu0 %916  ;;  %v942_v24 = vpop.permute.xlu1 %941 }
 0x2af   :  { %v924_v25 = vmul.f32 %v917_v23, %v1381_v60  ;;  %v925_v43 = vmul.f32 %v917_v23, %v1384_v61  ;;  %v926_v35 = vmul.f32 %v917_v23, %v1387_v63  ;;  %v927_v34 = vmul.f32 %v917_v23, %v1390_v0 }
 0x2b0   :  { %v928_v6 = vmul.f32 %v917_v23, %v1393_v2  ;;  %v929_v44 = vmul.f32 %v917_v23, %v1396_v17  ;;  %v930_v12 = vmul.f32 %v917_v23, %v1399_v19  ;;  %v931_v9 = vmul.f32 %v917_v23, %v1402_v20 }
 0x2b1   :  { %v948_v52 = vmul.f32 %v942_v24, %v1315_v26  ;;  %v949_v22 = vmul.f32 %v942_v24, %v1318_v27  ;;  %v950_v60 = vmul.f32 %v942_v24, %v1321_v28  ;;  %v951_v61 = vmul.f32 %v942_v24, %v1324_v29  ;;  %v2030_v28 = vld [vmem:[#allocation20_spill] sm:$0xff]  ;;  %v2031_v29 = vld [vmem:[#allocation21_spill] sm:$0xff] }
 0x2b2   :  { %v952_v63 = vmul.f32 %v942_v24, %v2026_v11  ;;  %v953_v0 = vmul.f32 %v942_v24, %v2027_v56  ;;  %v954_v2 = vmul.f32 %v942_v24, %v2028_v48  ;;  %v955_v17 = vmul.f32 %v942_v24, %v2029_v4  ;;  %v946_v40 = vpop.permute.xlu1 %945  ;;  %v2032_v11 = vld [vmem:[#allocation22_spill] sm:$0xff]  ;;  %v2033_v56 = vld [vmem:[#allocation23_spill] sm:$0xff]  ;;  %v2034_v48 = vld [vmem:[#allocation24_spill] sm:$0xff] }
 0x2b3   :  { %v964_v19 = vadd.f32 %v948_v52, %v924_v25  ;;  %v965_v5 = vadd.f32 %v949_v22, %v925_v43  ;;  %v966_v20 = vadd.f32 %v950_v60, %v926_v35  ;;  %v967_v53 = vadd.f32 %v951_v61, %v927_v34  ;;  %v2035_v24 = vld [vmem:[#allocation25_spill] sm:$0xff]  ;;  %v2036_v25 = vld [vmem:[#allocation26_spill] sm:$0xff]  ;;  %v2037_v35 = vld [vmem:[#allocation27_spill] sm:$0xff] }
 0x2b4   :  { %v968_v26 = vadd.f32 %v952_v63, %v928_v6  ;;  %v969_v50 = vadd.f32 %v953_v0, %v929_v44  ;;  %v970_v27 = vadd.f32 %v954_v2, %v930_v12  ;;  %v971_v7 = vadd.f32 %v955_v17, %v931_v9  ;;  %v2038_v0 = vld [vmem:[#allocation36_spill] sm:$0xff]  ;;  %v2039_v17 = vld [vmem:[#allocation37_spill] sm:$0xff] }
 0x2b5   :  { %v956_v59 = vmul.f32 %v946_v40, %v2030_v28  ;;  %v957_v23 = vmul.f32 %v946_v40, %v2031_v29  ;;  %v958_v31 = vmul.f32 %v946_v40, %v2032_v11  ;;  %v959_v32 = vmul.f32 %v946_v40, %v2033_v56  ;;  %v2040_v29 = vld [vmem:[#allocation38_spill] sm:$0xff] }
 0x2b6   :  { %v960_v38 = vmul.f32 %v946_v40, %v2034_v48  ;;  %v961_v4 = vmul.f32 %v946_v40, %v2035_v24  ;;  %v962_v43 = vmul.f32 %v946_v40, %v2036_v25  ;;  %v963_v34 = vmul.f32 %v946_v40, %v2037_v35  ;;  %v2041_v40 = vld [vmem:[#allocation39_spill] sm:$0xff]  ;;  %v2044_v24 = vld [vmem:[#allocation30_spill] sm:$0xff] }
 0x2b7   :  { %v982_v6 = vpop.permute.xlu1 %981  ;;  %v972_v44 = vadd.f32 %v956_v59, %v932_v39  ;;  %v973_v12 = vadd.f32 %v957_v23, %v933_v8  ;;  %v974_v9 = vadd.f32 %v958_v31, %v934_v47  ;;  %v975_v52 = vadd.f32 %v959_v32, %v935_v58  ;;  %v2045_v35 = vld [vmem:[#allocation31_spill] sm:$0xff] }
 0x2b8   :  { %v988_v22 = vmul.f32 %v982_v6, %v1661_v62  ;;  %v989_v60 = vmul.f32 %v982_v6, %v1664_v30  ;;  %v990_v61 = vmul.f32 %v982_v6, %v1667_v45  ;;  %v991_v63 = vmul.f32 %v982_v6, %v1670_v21  ;;  %v2042_v45 = vld [vmem:[#allocation28_spill] sm:$0xff]  ;;  %v2043_v21 = vld [vmem:[#allocation29_spill] sm:$0xff] }
 0x2b9   :  { %v992_v2 = vmul.f32 %v982_v6, %v2038_v0  ;;  %v993_v28 = vmul.f32 %v982_v6, %v2039_v17  ;;  %v994_v11 = vmul.f32 %v982_v6, %v2040_v29  ;;  %v995_v56 = vmul.f32 %v982_v6, %v2041_v40  ;;  %v2046_v17 = vld [vmem:[#allocation32_spill] sm:$0xff]  ;;  %v2047_v6 = vld [vmem:[#allocation33_spill] sm:$0xff] }
 0x2ba   :  { %v1004_v39 = vadd.f32 %v988_v22, %v964_v19  ;;  %v1005_v8 = vadd.f32 %v989_v60, %v965_v5  ;;  %v1006_v31 = vadd.f32 %v990_v61, %v966_v20  ;;  %v1007_v32 = vadd.f32 %v991_v63, %v967_v53  ;;  %v2048_v5 = vld [vmem:[#allocation34_spill] sm:$0xff]  ;;  %v2049_v53 = vld [vmem:[#allocation35_spill] sm:$0xff] }
 0x2bb   :  { %v1008_v47 = vadd.f32 %v992_v2, %v968_v26  ;;  %v1009_v62 = vadd.f32 %v993_v28, %v969_v50  ;;  %v1010_v58 = vadd.f32 %v994_v11, %v970_v27  ;;  %v1011_v30 = vadd.f32 %v995_v56, %v971_v7  ;;  %v986_v59 = vpop.permute.xlu1 %985 }
 0x2bc   :  { %v996_v23 = vmul.f32 %v986_v59, %v2042_v45  ;;  %v997_v48 = vmul.f32 %v986_v59, %v2043_v21  ;;  %v998_v25 = vmul.f32 %v986_v59, %v2044_v24  ;;  %v999_v0 = vmul.f32 %v986_v59, %v2045_v35 }
 0x2bd   :  { %v1000_v29 = vmul.f32 %v986_v59, %v2046_v17  ;;  %v1001_v19 = vmul.f32 %v986_v59, %v2047_v6  ;;  %v1002_v20 = vmul.f32 %v986_v59, %v2048_v5  ;;  %v1003_v26 = vmul.f32 %v986_v59, %v2049_v53 }
 0x2be   :  { %v976_v50 = vadd.f32 %v960_v38, %v1861_v49  ;;  %v977_v27 = vadd.f32 %v961_v4, %v1864_v1  ;;  %v978_v7 = vadd.f32 %v962_v43, %v1867_v13  ;;  %v979_v22 = vadd.f32 %v963_v34, %v1870_v10 }
 0x2bf   :  { %v1012_v60 = vadd.f32 %v996_v23, %v972_v44  ;;  %v1013_v61 = vadd.f32 %v997_v48, %v973_v12  ;;  %v1014_v63 = vadd.f32 %v998_v25, %v974_v9  ;;  %v1015_v2 = vadd.f32 %v999_v0, %v975_v52 }
 0x2c0   :  { %v1022_v28 = vpop.permute.xlu1 %1021  ;;  %v1016_v11 = vadd.f32 %v1000_v29, %v976_v50  ;;  %v1017_v40 = vadd.f32 %v1001_v19, %v977_v27  ;;  %v1018_v56 = vadd.f32 %v1002_v20, %v978_v7  ;;  %v1019_v45 = vadd.f32 %v1003_v26, %v979_v22  ;;  %v2053_v22 = vld [vmem:[#allocation43_spill] sm:$0xff] }
 0x2c1   :  { %v1028_v21 = vmul.f32 %v1022_v28, %v1786_v55  ;;  %v1029_v59 = vmul.f32 %v1022_v28, %v1789_v57  ;;  %v1030_v38 = vmul.f32 %v1022_v28, %v1792_v46  ;;  %v1031_v49 = vmul.f32 %v1022_v28, %v1798_v54 }
 0x2c2   :  { %v1032_v1 = vmul.f32 %v1022_v28, %v1801_v36  ;;  %v1033_v13 = vmul.f32 %v1022_v28, %v1811_v37  ;;  %v1034_v10 = vmul.f32 %v1022_v28, %v1820_v42  ;;  %v1035_v4 = vmul.f32 %v1022_v28, %v1827_v3  ;;  %v2050_v42 = vld [vmem:[#allocation40_spill] sm:$0xff] }
 0x2c3   :  { %v1044_v43 = vadd.f32 %v1028_v21, %v1004_v39  ;;  %v1045_v34 = vadd.f32 %v1029_v59, %v1005_v8  ;;  %v1046_v44 = vadd.f32 %v1030_v38, %v1006_v31  ;;  %v1047_v12 = vadd.f32 %v1031_v49, %v1007_v32  ;;  %v1179_v8 = vld [vmem:[#allocation2] sm:$0xff] }
 0x2c4   :  { %v1048_v9 = vadd.f32 %v1032_v1, %v1008_v47  ;;  %v1049_v55 = vadd.f32 %v1033_v13, %v1009_v62  ;;  %v1050_v52 = vadd.f32 %v1034_v10, %v1010_v58  ;;  %v1051_v57 = vadd.f32 %v1035_v4, %v1011_v30  ;;  %v1026_v23 = vpop.permute.xlu1 %1025  ;;  %v1180_v47 = vld [vmem:[#allocation2 + $0x8] sm:$0xff]  ;;  %v1181_v30 = vld [vmem:[#allocation2 + $0x10] sm:$0xff] }
 0x2c5   :  { %v1060_v46 = vmul.f32 0.01, %v1044_v43  ;;  %v1061_v48 = vmul.f32 0.01, %v1045_v34  ;;  %v1062_v54 = vmul.f32 0.01, %v1046_v44  ;;  %v1036_v36 = vmul.f32 %v1026_v23, %v1726_v51 }
 0x2c6   :  { %v1063_v24 = vmul.f32 0.01, %v1047_v12  ;;  %v1064_v37 = vmul.f32 0.01, %v1048_v9  ;;  %v1065_v25 = vmul.f32 0.01, %v1049_v55  ;;  %v1037_v35 = vmul.f32 %v1026_v23, %v2050_v42 }
 0x2c7   :  { %v1066_v3 = vmul.f32 0.01, %v1050_v52  ;;  %v1067_v39 = vmul.f32 0.01, %v1051_v57  ;;  %v1076_v31 = vadd.f32 %v1179_v8, %v1060_v46  ;;  %v1077_v32 = vadd.f32 %v1061_v48, %v1284_v14  ;;  %v1182_v51 = vld [vmem:[#allocation2 + $0x18] sm:$0xff]  ;;  %v2051_v14 = vld [vmem:[#allocation41_spill] sm:$0xff] }
 0x2c8   :  { %v1078_v62 = vadd.f32 %v1180_v47, %v1062_v54  ;;  %v1079_v58 = vadd.f32 %v1063_v24, %v1288_v15  ;;  %v1080_v0 = vadd.f32 %v1181_v30, %v1064_v37  ;;  %v1081_v17 = vadd.f32 %v1065_v25, %v1292_v16  ;;  %v2052_v15 = vld [vmem:[#allocation42_spill] sm:$0xff]  ;;  %v2054_v16 = vld [vmem:[#allocation44_spill] sm:$0xff]  ;;  %v2061_v48 = vld [vmem:[#allocation15_spill] sm:$0xff] }
 0x2c9   :  { %v1082_v29 = vadd.f32 %v1182_v51, %v1066_v3  ;;  %v1083_v6 = vadd.f32 %v1067_v39, %v1298_v18  ;;  %v1108_v19 = vcombine.low %v1076_v31, %v1077_v32  ;;  %v1038_v5 = vmul.f32 %v1026_v23, %v1733_v41  ;;  %v2055_v52 = vld [vmem:[#allocation12_spill] sm:$0xff] }
 0x2ca   :  { %v1109_v20 = vcombine.low %v1078_v62, %v1079_v58  ;;  %v1110_v53 = vcombine.low %v1080_v0, %v1081_v17  ;;  %v1039_v26 = vmul.f32 %v1026_v23, %v1736_v33  ;;  %v1040_v50 = vmul.f32 %v1026_v23, %v2051_v14 }
 0x2cb   :  { %v1111_v27 = vcombine.low %v1082_v29, %v1083_v6  ;;  %1124 = vst [vmem:[#allocation5] sm:$0xff] %v1108_v19  ;;  %v1041_v7 = vmul.f32 %v1026_v23, %v2052_v15  ;;  %v1042_v28 = vmul.f32 %v1026_v23, %v2053_v22  ;;  %v1043_v21 = vmul.f32 %v1026_v23, %v2054_v16  ;;  %v2056_v23 = vld [vmem:[#allocation16_spill] sm:$0xff] }
 0x2cc   :  { %1125 = vst [vmem:[#allocation5 + $0x8] sm:$0xff] %v1109_v20  ;;  %1126 = vst [vmem:[#allocation5 + $0x10] sm:$0xff] %v1110_v53  ;;  %v1052_v18 = vadd.f32 %v1036_v36, %v1012_v60  ;;  %v1053_v59 = vadd.f32 %v1037_v35, %v1013_v61  ;;  %v1054_v38 = vadd.f32 %v1038_v5, %v1014_v63  ;;  %v2057_v61 = vld [vmem:[#allocation13_spill] sm:$0xff]  ;;  %v2062_v36 = vld [vmem:[#allocation19_spill] sm:$0xff] }
 0x2cd   :  { %v1055_v41 = vadd.f32 %v1039_v26, %v1015_v2  ;;  %1127 = vst [vmem:[#allocation5 + $0x18] sm:$0xff] %v1111_v27  ;;  %v1056_v49 = vadd.f32 %v1040_v50, %v1016_v11  ;;  %v1057_v1 = vadd.f32 %v1041_v7, %v1017_v40  ;;  %v1058_v33 = vadd.f32 %v1042_v28, %v1018_v56  ;;  %v2058_v2 = vld [vmem:[#allocation17_spill] sm:$0xff]  ;;  %v2059_v11 = vld [vmem:[#allocation14_spill] sm:$0xff] }
 0x2ce   :  { %v1059_v13 = vadd.f32 %v1043_v21, %v1019_v45  ;;  %v1068_v10 = vmul.f32 0.01, %v1052_v18  ;;  %v1069_v4 = vmul.f32 0.01, %v1053_v59  ;;  %v1070_v43 = vmul.f32 0.01, %v1054_v38 }
 0x2cf   :  { %v1071_v34 = vmul.f32 0.01, %v1055_v41  ;;  %v1072_v44 = vmul.f32 0.01, %v1056_v49  ;;  %v1073_v12 = vmul.f32 0.01, %v1057_v1 }
 0x2d0   :  { %v1074_v9 = vmul.f32 0.01, %v1058_v33  ;;  %v1075_v55 = vmul.f32 0.01, %v1059_v13  ;;  %v1084_v57 = vadd.f32 %v1068_v10, %v2055_v52  ;;  %v1085_v60 = vadd.f32 %v1069_v4, %v2056_v23  ;;  %v2060_v56 = vld [vmem:[#allocation18_spill] sm:$0xff] }
 0x2d1   :  { %v1086_v63 = vadd.f32 %v1070_v43, %v2057_v61  ;;  %v1087_v46 = vadd.f32 %v1071_v34, %v2058_v2  ;;  %v1088_v40 = vadd.f32 %v1072_v44, %v2059_v11  ;;  %v1089_v45 = vadd.f32 %v1073_v12, %v2060_v56 }
 0x2d2   :  { %v1090_v54 = vadd.f32 %v1074_v9, %v2061_v48  ;;  %v1091_v24 = vadd.f32 %v1075_v55, %v2062_v36  ;;  %v1112_v37 = vcombine.low %v1084_v57, %v1085_v60 }
 0x2d3   :  { %v1113_v25 = vcombine.low %v1086_v63, %v1087_v46  ;;  %v1114_v42 = vcombine.low %v1088_v40, %v1089_v45 }
 0x2d4   :  { %v1115_v35 = vcombine.low %v1090_v54, %v1091_v24  ;;  %1128 = vst [vmem:[#allocation5 + $0x20] sm:$0xff] %v1112_v37 }
 0x2d5   :  { %1129 = vst [vmem:[#allocation5 + $0x28] sm:$0xff] %v1113_v25  ;;  %1130 = vst [vmem:[#allocation5 + $0x30] sm:$0xff] %v1114_v42 }
 0x2d6   :  { %1131 = vst [vmem:[#allocation5 + $0x38] sm:$0xff] %v1115_v35 }
 0x2d7   :  { %1214 = shalt.err (!%p1211_p9)
}
 0x2d8   :  { %1143 = dma.vmem_to_hbm [thread:$0]  %s1138_s13, 1024, %s1951_s1, [#allocation4], %s1228_s9, %s1228_s9, %s1229_s10  }
 0x2d9   :  { %1225 = dma.done.wait [#allocation4], 1024  }
 0x2da   :  { %1226 = vsyncadd [#allocation4], 4294966272 }
 0x2db   :  { %1147 = vsyncpa [#allocation3], 1 }
 0x2dc   :  { %1148 = vsyncpa [#allocation4], 1 }

</bundles_post_ra>
